<compile_context>
chip_gen: v7x
topology: tpu7x:2x2x1
jax: 0.10.0
libtpu: 0.0.40
codegen_flags: <defaults>
</compile_context>

<pallas_src>
import numpy as np
import jax
import jax.numpy as jnp
from jax.experimental import pallas as pl
from jax.experimental.pallas import tpu as pltpu

_LANES = 128


def _make_focal_kernel(C, gamma, alpha_list, needs_mask):
    gamma = float(gamma)
    use_alpha = alpha_list is not None
    int_gamma = int(gamma) if (gamma >= 0.0 and gamma == int(gamma)) else None

    def kernel(x_ref, t_ref, o_ref):
        # x_ref: (1, C, TS, 128) logits tile, t_ref: (1, TS, 128) int32 targets,
        # o_ref: (1, 128) lane-dense partial-sum slot owned by this grid step.
        t = t_ref[0]                                        # (TS, 128) int32

        # Per-class slabs; class dim is small & static -> unrolled, pure VPU.
        xs = [x_ref[0, c].astype(jnp.float32) for c in range(C)]

        # Pass 1: running max over classes (numerical stability).
        m = xs[0]
        for c in range(1, C):
            m = jnp.maximum(m, xs[c])

        # Pass 2: sum-exp + one-hot gather of (x_t - max) and (optionally) alpha_t.
        se = jnp.zeros_like(m)                              # sum_c exp(x_c - max)
        zt = jnp.zeros_like(m)                              # (x - max) gathered at target
        at = jnp.zeros_like(m) if use_alpha else None       # alpha gathered at target
        for c in range(C):
            zc = xs[c] - m
            se = se + jnp.exp(zc)
            sel = t == c
            zt = jnp.where(sel, zc, zt)
            if use_alpha:
                at = jnp.where(sel, jnp.float32(alpha_list[c]), at)

        logpt = zt - jnp.log(se)                            # log_softmax at target class
        pt = jnp.exp(logpt)
        if use_alpha:
            logpt = logpt * at

        one_minus_pt = 1.0 - pt
        if int_gamma is not None:                           # gamma = 0, 1, 2, ... -> multiplies
            focal = jnp.ones_like(pt)
            for _ in range(int_gamma):
                focal = focal * one_minus_pt
        else:                                               # non-integer gamma -> pow
            focal = jnp.power(jnp.maximum(one_minus_pt, 0.0), gamma)

        loss = -focal * logpt                               # (TS, 128)
        if needs_mask:
            loss = jnp.where(t >= 0, loss, 0.0)             # padded tail elements

        o_ref[...] = jnp.sum(loss, axis=0, keepdims=True)   # (1, 128) partial sum

    return kernel


def focal_loss_pallas(logits_nchw, target_nhw, gamma=0.0, alpha=None,
                      size_average=True, max_tile_rows=512,
                      vmem_budget_per_buf=4 * 1024 * 1024):
    """logits_nchw: (N, C, H, W) float; target_nhw: (N, H, W) int in [0, C)."""
    N, C, H, W = logits_nchw.shape
    msp = H * W
    count = N * msp

    # Static alpha (matches the PyTorch module, which materializes self.alpha at __init__).
    if alpha is None:
        alpha_list = None
    else:
        if isinstance(alpha, (float, int)):
            avec = [float(alpha), 1.0 - float(alpha)]
        else:
            avec = [float(a) for a in np.asarray(alpha).reshape(-1)]
        avec = (avec + [1.0] * C)[:C]      # pad; extra classes never hit by valid targets
        alpha_list = avec

    # Free reshapes: NCHW is already (N, C, spatial)-contiguous. No transpose, no copy.
    x3 = logits_nchw.reshape(N, C, msp)
    t2 = target_nhw.reshape(N, msp).astype(jnp.int32)

    # Tile sizing: TS rows of 128 lanes per step, capped by a per-buffer VMEM budget
    # (double-buffered by BlockSpec) so it stays safe on v7x's smaller VMEM.
    itemsize = jnp.dtype(logits_nchw.dtype).itemsize
    S = pl.cdiv(msp, _LANES)                       # number of 128-lane spatial rows
    rows_by_vmem = max(8, vmem_budget_per_buf // (C * _LANES * itemsize))
    ts_cap = max(8, (min(int(max_tile_rows), int(rows_by_vmem)) // 8) * 8)
    if S <= ts_cap:
        TS, S_pad = S, S
    else:
        TS = ts_cap
        S_pad = pl.cdiv(S, TS) * TS

    m_pad = S_pad * _LANES
    needs_mask = m_pad != msp
    if needs_mask:
        # Ragged tail: pad logits with zeros and targets with -1 (masked in-kernel).
        x3 = jnp.pad(x3, ((0, 0), (0, 0), (0, m_pad - msp)))
        t2 = jnp.pad(t2, ((0, 0), (0, m_pad - msp)), constant_values=-1)

    x4 = x3.reshape(N, C, S_pad, _LANES)
    t3 = t2.reshape(N, S_pad, _LANES)

    n_j = S_pad // TS
    grid = (N, n_j)
    n_out = N * n_j

    kernel = _make_focal_kernel(C, gamma, alpha_list, needs_mask)

    partials = pl.pallas_call(
        kernel,
        out_shape=jax.ShapeDtypeStruct((1, n_out * _LANES), jnp.float32),
        grid_spec=pltpu.PrefetchScalarGridSpec(
            num_scalar_prefetch=0,
            grid=grid,
            in_specs=[
                pl.BlockSpec((1, C, TS, _LANES), lambda n, j: (n, 0, j, 0)),  # logits
                pl.BlockSpec((1, TS, _LANES), lambda n, j: (n, j, 0)),        # targets
            ],
            out_specs=pl.BlockSpec((1, _LANES), lambda n, j: (0, n * n_j + j)),
        ),
        compiler_params=pltpu.CompilerParams(
            # Every grid step owns a distinct output block -> fully parallel grid
            # (shards across both TensorCores on v7x; harmless on v5e/v6e).
            dimension_semantics=("parallel", "parallel"),
        ),
    )(x4, t3)

    total = jnp.sum(partials)
    if size_average:
        return total / jnp.float32(count)
    return total


def _focal_loss_ref(logits_nchw, target_nhw, gamma, alpha, size_average):
    """Pure-JAX reference mirroring the PyTorch module's forward."""
    N, C, H, W = logits_nchw.shape
    x = jnp.transpose(logits_nchw, (0, 2, 3, 1)).reshape(-1, C).astype(jnp.float32)
    t = target_nhw.reshape(-1)
    logp = jax.nn.log_softmax(x, axis=-1)
    logpt = jnp.take_along_axis(logp, t[:, None], axis=1)[:, 0]
    pt = jnp.exp(logpt)
    if alpha is not None:
        if isinstance(alpha, (float, int)):
            avec = jnp.array([alpha, 1.0 - alpha], dtype=jnp.float32)
        else:
            avec = jnp.asarray(alpha, dtype=jnp.float32)
        logpt = logpt * avec[t]
    loss = -1.0 * (1.0 - pt) ** gamma * logpt
    return loss.mean() if size_average else loss.sum()


def _run_case(key, N, C, H, W, gamma, alpha, size_average, dtype, rtol, atol):
    k1, k2 = jax.random.split(key)
    logits = jax.random.normal(k1, (N, C, H, W), dtype=jnp.float32).astype(dtype)
    target = jax.random.randint(k2, (N, H, W), 0, C, dtype=jnp.int32)
    out = focal_loss_pallas(logits, target, gamma=gamma, alpha=alpha,
                            size_average=size_average)
    out = jax.block_until_ready(out)
    ref = _focal_loss_ref(logits.astype(jnp.float32), target, gamma, alpha, size_average)
    np.testing.assert_allclose(np.asarray(out), np.asarray(ref), rtol=rtol, atol=atol)


if __name__ == "__main__":
    key = jax.random.PRNGKey(0)
    k1, k2, k3 = jax.random.split(key, 3)

    # Case 1: the canonical small shape — per-class alpha list, gamma=2, mean reduction.
    _run_case(k1, N=2, C=4, H=16, W=16, gamma=2.0, alpha=[0.1, 0.2, 0.3, 0.4],
              size_average=True, dtype=jnp.float32, rtol=1e-5, atol=1e-6)

    # Case 2: ragged spatial (mask path), no alpha, gamma=0, sum reduction.
    _run_case(k2, N=2, C=3, H=7, W=9, gamma=0.0, alpha=None,
              size_average=False, dtype=jnp.float32, rtol=1e-5, atol=1e-5)

    # Case 3: binary classes with scalar alpha (-> [a, 1-a]) and non-integer gamma (pow path).
    _run_case(k3, N=2, C=2, H=8, W=8, gamma=1.5, alpha=0.25,
              size_average=True, dtype=jnp.float32, rtol=1e-5, atol=1e-6)

    print("KERNEL_OK")
</pallas_src>

<mosaic_0001>
module attributes {stable_mosaic.version = 11 : i64} {
  func.func @kernel(%arg0: i32, %arg1: i32, %arg2: memref<1x4x2x128xf32, #tpu.memory_space<vmem>>, %arg3: memref<1x2x128xi32, #tpu.memory_space<vmem>>, %arg4: memref<1x128xf32, #tpu.memory_space<vmem>>) attributes {dimension_semantics = [#tpu.dimension_semantics<parallel>, #tpu.dimension_semantics<parallel>], iteration_bounds = array<i64: 2, 1>, scalar_prefetch = 0 : i64, scratch_operands = 0 : i64, tpu.core_type = #tpu.core_type<tc>, window_params = [{transform_indices = @transform_0, window_bounds = array<i64: 1, 4, 2, 128>}, {transform_indices = @transform_1, window_bounds = array<i64: 1, 2, 128>}, {transform_indices = @transform_2, window_bounds = array<i64: 1, 128>}]} {
    %c0 = arith.constant 0 : index
    %c0_0 = arith.constant 0 : index
    %c0_1 = arith.constant 0 : index
    %0 = vector.load %arg3[%c0, %c0_0, %c0_1] : memref<1x2x128xi32, #tpu.memory_space<vmem>>, vector<1x2x128xi32>
    %1 = vector.shape_cast %0 : vector<1x2x128xi32> to vector<2x128xi32>
    %c0_2 = arith.constant 0 : index
    %c0_3 = arith.constant 0 : index
    %c0_4 = arith.constant 0 : index
    %c0_5 = arith.constant 0 : index
    %2 = vector.load %arg2[%c0_2, %c0_3, %c0_4, %c0_5] : memref<1x4x2x128xf32, #tpu.memory_space<vmem>>, vector<1x1x2x128xf32>
    %3 = vector.shape_cast %2 : vector<1x1x2x128xf32> to vector<2x128xf32>
    %c0_6 = arith.constant 0 : index
    %c1 = arith.constant 1 : index
    %c0_7 = arith.constant 0 : index
    %c0_8 = arith.constant 0 : index
    %4 = vector.load %arg2[%c0_6, %c1, %c0_7, %c0_8] : memref<1x4x2x128xf32, #tpu.memory_space<vmem>>, vector<1x1x2x128xf32>
    %5 = vector.shape_cast %4 : vector<1x1x2x128xf32> to vector<2x128xf32>
    %c0_9 = arith.constant 0 : index
    %c2 = arith.constant 2 : index
    %c0_10 = arith.constant 0 : index
    %c0_11 = arith.constant 0 : index
    %6 = vector.load %arg2[%c0_9, %c2, %c0_10, %c0_11] : memref<1x4x2x128xf32, #tpu.memory_space<vmem>>, vector<1x1x2x128xf32>
    %7 = vector.shape_cast %6 : vector<1x1x2x128xf32> to vector<2x128xf32>
    %c0_12 = arith.constant 0 : index
    %c3 = arith.constant 3 : index
    %c0_13 = arith.constant 0 : index
    %c0_14 = arith.constant 0 : index
    %8 = vector.load %arg2[%c0_12, %c3, %c0_13, %c0_14] : memref<1x4x2x128xf32, #tpu.memory_space<vmem>>, vector<1x1x2x128xf32>
    %9 = vector.shape_cast %8 : vector<1x1x2x128xf32> to vector<2x128xf32>
    %10 = arith.maximumf %3, %5 : vector<2x128xf32>
    %11 = arith.maximumf %10, %7 : vector<2x128xf32>
    %12 = arith.maximumf %11, %9 : vector<2x128xf32>
    %cst = arith.constant 0.000000e+00 : f32
    %13 = vector.broadcast %cst : f32 to vector<2x128xf32>
    %cst_15 = arith.constant 0.000000e+00 : f32
    %14 = vector.broadcast %cst_15 : f32 to vector<2x128xf32>
    %cst_16 = arith.constant 0.000000e+00 : f32
    %15 = vector.broadcast %cst_16 : f32 to vector<2x128xf32>
    %16 = arith.subf %3, %12 : vector<2x128xf32>
    %17 = math.exp %16 : vector<2x128xf32>
    %18 = arith.addf %13, %17 : vector<2x128xf32>
    %c0_i32 = arith.constant 0 : i32
    %19 = vector.broadcast %c0_i32 : i32 to vector<2x128xi32>
    %20 = arith.cmpi eq, %1, %19 : vector<2x128xi32>
    %21 = arith.select %20, %16, %14 : vector<2x128xi1>, vector<2x128xf32>
    %cst_17 = arith.constant 1.000000e-01 : f32
    %22 = vector.broadcast %cst_17 : f32 to vector<2x128xf32>
    %23 = arith.select %20, %22, %15 : vector<2x128xi1>, vector<2x128xf32>
    %24 = arith.subf %5, %12 : vector<2x128xf32>
    %25 = math.exp %24 : vector<2x128xf32>
    %26 = arith.addf %18, %25 : vector<2x128xf32>
    %c1_i32 = arith.constant 1 : i32
    %27 = vector.broadcast %c1_i32 : i32 to vector<2x128xi32>
    %28 = arith.cmpi eq, %1, %27 : vector<2x128xi32>
    %29 = arith.select %28, %24, %21 : vector<2x128xi1>, vector<2x128xf32>
    %cst_18 = arith.constant 2.000000e-01 : f32
    %30 = vector.broadcast %cst_18 : f32 to vector<2x128xf32>
    %31 = arith.select %28, %30, %23 : vector<2x128xi1>, vector<2x128xf32>
    %32 = arith.subf %7, %12 : vector<2x128xf32>
    %33 = math.exp %32 : vector<2x128xf32>
    %34 = arith.addf %26, %33 : vector<2x128xf32>
    %c2_i32 = arith.constant 2 : i32
    %35 = vector.broadcast %c2_i32 : i32 to vector<2x128xi32>
    %36 = arith.cmpi eq, %1, %35 : vector<2x128xi32>
    %37 = arith.select %36, %32, %29 : vector<2x128xi1>, vector<2x128xf32>
    %cst_19 = arith.constant 3.000000e-01 : f32
    %38 = vector.broadcast %cst_19 : f32 to vector<2x128xf32>
    %39 = arith.select %36, %38, %31 : vector<2x128xi1>, vector<2x128xf32>
    %40 = arith.subf %9, %12 : vector<2x128xf32>
    %41 = math.exp %40 : vector<2x128xf32>
    %42 = arith.addf %34, %41 : vector<2x128xf32>
    %c3_i32 = arith.constant 3 : i32
    %43 = vector.broadcast %c3_i32 : i32 to vector<2x128xi32>
    %44 = arith.cmpi eq, %1, %43 : vector<2x128xi32>
    %45 = arith.select %44, %40, %37 : vector<2x128xi1>, vector<2x128xf32>
    %cst_20 = arith.constant 4.000000e-01 : f32
    %46 = vector.broadcast %cst_20 : f32 to vector<2x128xf32>
    %47 = arith.select %44, %46, %39 : vector<2x128xi1>, vector<2x128xf32>
    %48 = math.log %42 : vector<2x128xf32>
    %49 = arith.subf %45, %48 : vector<2x128xf32>
    %50 = math.exp %49 : vector<2x128xf32>
    %51 = arith.mulf %49, %47 : vector<2x128xf32>
    %cst_21 = arith.constant 1.000000e+00 : f32
    %52 = vector.broadcast %cst_21 : f32 to vector<2x128xf32>
    %53 = arith.subf %52, %50 : vector<2x128xf32>
    %cst_22 = arith.constant 1.000000e+00 : f32
    %54 = vector.broadcast %cst_22 : f32 to vector<2x128xf32>
    %55 = arith.mulf %54, %53 : vector<2x128xf32>
    %56 = arith.mulf %55, %53 : vector<2x128xf32>
    %cst_23 = arith.constant 0.000000e+00 : f32
    %57 = vector.broadcast %cst_23 : f32 to vector<2x128xf32>
    %58 = arith.subf %57, %56 : vector<2x128xf32>
    %59 = arith.mulf %58, %51 : vector<2x128xf32>
    %cst_24 = arith.constant dense<0.000000e+00> : vector<128xf32>
    %60 = vector.multi_reduction <add>, %59, %cst_24 [0] : vector<2x128xf32> to vector<128xf32>
    %61 = vector.shape_cast %60 : vector<128xf32> to vector<1x128xf32>
    %c0_25 = arith.constant 0 : index
    %c0_26 = arith.constant 0 : index
    %62 = vector.load %arg4[%c0_25, %c0_26] : memref<1x128xf32, #tpu.memory_space<vmem>>, vector<1x128xf32>
    tpu.vector_store %arg4[%c0_25, %c0_26], %61 {strides = array<i32>} : memref<1x128xf32, #tpu.memory_space<vmem>>, vector<1x128xf32>,
    return
  }
  func.func @transform_0(%arg0: i32, %arg1: i32) -> (i32, i32, i32, i32) {
    %c0_i32 = arith.constant 0 : i32
    %c0_i32_0 = arith.constant 0 : i32
    %c0_i32_1 = arith.constant 0 : i32
    return %arg0, %c0_i32, %arg1, %c0_i32_0 : i32, i32, i32, i32
  }
  func.func @transform_1(%arg0: i32, %arg1: i32) -> (i32, i32, i32) {
    %c0_i32 = arith.constant 0 : i32
    %c0_i32_0 = arith.constant 0 : i32
    return %arg0, %arg1, %c0_i32 : i32, i32, i32
  }
  func.func @transform_2(%arg0: i32, %arg1: i32) -> (i32, i32) {
    %c1_i32 = arith.constant 1 : i32
    %0 = arith.muli %arg0, %c1_i32 : i32
    %1 = arith.addi %0, %arg1 : i32
    %c0_i32 = arith.constant 0 : i32
    %c0_i32_0 = arith.constant 0 : i32
    return %c0_i32, %1 : i32, i32
  }
}

</mosaic_0001>

<bundles_post_ra>
// kernel: tpu_custom_call.1
= control target key start
LH: loop header
LB: loop body
LE: loop exit
PB: predicated region body
PF: predicated region fallthrough
CT: control target
= control target key end

     0   :  { %7 = vsyncpa [#allocation3], 0  ;;  %s880_s0 = inlined_call_operand.hbm [shape: f32[2,4,2,128], index: 0, kind: input, shape index: {}]   ;;  %s881_s1 = inlined_call_operand.hbm [shape: s32[2,2,128], index: 1, kind: input, shape index: {}]   ;;  %s882_s2 = inlined_call_operand.hbm [shape: f32[1,256], index: 2, kind: output, shape index: {}]  }
   0x1   :  { %9 = vsyncpa [#allocation3 + $0x1], 0 }
   0x2   :  { %10 = vsyncpa [#allocation6], 0 }
   0x3   :  { %12 = vsyncpa [#allocation6 + $0x1], 0 }
   0x4   :  { %13 = vsyncpa [#allocation4], 0 }
   0x5   :  { %15 = vsyncpa [#allocation4 + $0x1], 0  ;;  %s662_s9 = smov 0   ;;  %s664_s10 = smov 0  }
   0x6   :  { %s666_s11 = smov 0   ;;  %s668_s12 = smov 0  }
   0x7   :  { %s670_s13 = smov 0   ;;  %s672_s14 = smov 0  }
   0x8 LB: > { %s392_s15 = sadd.s32 4294967295, %s639_s14   ;;  %s393_s16 = sadd.s32 4294967294, %s639_s14   ;;  %s639_s14 = sphi %s672_s14, %s21_s14   ;;  %s635_s13 = sphi %s670_s13, %s901_s13   ;;  %s631_s12 = sphi %s668_s12, %s900_s12   ;;  %s627_s11 = sphi %s666_s11, %s899_s11   ;;  %s623_s10 = sphi %s664_s10, %s898_s10   ;;  %s619_s9 = sphi %s662_s9, %s897_s9  }
   0x9   : > { %s33_s17 = sadd.s32 1, %s635_s13  ;;  %s42_s18 = sadd.s32 1, %s627_s11 }
   0xa   : > { %p35_p0 = scmp.ge.s32.totalorder %s33_s17, 2  ;;  %p49_p1 = scmp.ne.s32.totalorder %s627_s11, %s623_s10 }
   0xb   : > { %p50_p2 = scmp.eq.s32.totalorder %s639_s14, 0  ;;  %p55_p3 = scmp.ne.s32.totalorder %s623_s10, %s619_s9 }
   0xc   : > { %s903_s17 = smov (%p35_p0, %s33_s17), 0  ;;  %p56_p5 = scmp.eq.s32.totalorder %s392_s15, 0 }
   0xd   : > { %p703_p4 = por %p50_p2, %p49_p1  ;;  %s37_s20 = ssub.s32 %s635_s13, %s903_s17 }
   0xe   : > { %p109_p6 = scmp.eq.s32.totalorder %s392_s15, 1  ;;  %p40_p7 = scmp.eq.s32.totalorder %s37_s20, 0 }
   0xf   : > { %p709_p8 = por %p56_p5, %p55_p3  ;;  %p115_p10 = scmp.eq.s32.totalorder %s393_s16, 1 }
  0x10   : > { %p713_p9 = por %p109_p6, %p49_p1  ;;  %p428_p13 = scmp.lt.s32.totalorder %s639_s14, 2 }
  0x11   : > { %s886_s21 = scalar_select %p709_p8, 1, 0 }
  0x12   : > { %s887_s22 = scalar_select %p713_p9, 1, 0 }
  0x13   : > { %s718_s23 = scalar_select %p40_p7, %s627_s11, %s42_s18  }
  0x14   : > { %p720_p11 = por %p115_p10, %p55_p3  ;;  %s727_s25 = sand.u32 1, %s627_s11  }
  0x15   : > { %s396_s26 = sshll.u32 %s727_s25, 3  ;;  %s410_s27 = sshll.u32 %s635_s13, 7 }
  0x16   : > { %s888_s24 = scalar_select %p720_p11, 1, 0 }
  0x17   : > { %s734_s30 = scalar_lea.hbm %s880_s0, %s410_s27  ;;  %s139_s3 = scalar_lea.vmem [#allocation2], %s396_s26 }
  0x18   : > { %s147_s4 = sshll.u32 %s139_s3, 4  ;;  %p740_p0 = pnand %p428_p13, %p703_p4  ;;  %s736_s4 = int_to_ptr.vmem [resolvable:$true] %s147_s4 }
  0x19   : > { %s136_s6 = scalar_lea.sflag [#allocation3], %s727_s25  ;;  %s493_s7 = scalar_lea.hbm %s734_s30, 128 }
  0x1a   : > { %p494_p2 = scmp.ne.s32.totalorder %s734_s30, %s493_s7  ;;  %p495_p3 = pneg %p740_p0 }
  0x1b   : > { %s498_s16 = scalar_lea.hbm %s880_s0, 256  ;;  %p499_p4 = scmp.lt.u32.totalorder %s734_s30, %s880_s0 }
  0x1c   : > { %p496_p5 = pnand %p495_p3, %p494_p2  ;;  %p500_p7 = scmp.lt.u32.totalorder %s498_s16, %s493_s7 }
  0x1d   : > { %p502_p13 = scmp.lt.u32.totalorder %s493_s7, %s734_s30 }
  0x1e   : > { %p497_p6 = pneg %p496_p5  ;;  %p501_p10 = por %p500_p7, %p499_p4 }
  0x20   : > { %p503_p12 = por %p502_p13, %p501_p10 }
  0x22   : > { %p504_p1 = pnand %p503_p12, %p497_p6 }
  0x24   : > { %507 = shalt.err (!%p504_p1)
}
  0x25   : > { %s508_s20 = scalar_lea.vmem %s736_s4, 128  ;;  %s641_s26 = smov [#allocation2]  }
  0x26   : > { %p509_p2 = scmp.ne.s32.totalorder %s736_s4, %s508_s20  ;;  %s513_s27 = sshll.u32 %s641_s26, 4  ;;  %s514_s27 = int_to_ptr.vmem [resolvable:$false] %s513_s27 }
  0x27   : > { %s515_s28 = scalar_lea.vmem %s514_s27, 256  ;;  %p516_p9 = scmp.lt.s32.totalorder %s736_s4, %s514_s27 }
  0x28   : > { %p511_p5 = pnand %p509_p2, %p495_p3  ;;  %p517_p4 = scmp.lt.s32.totalorder %s515_s28, %s508_s20 }
  0x2a   : > { %p512_p11 = pneg %p511_p5  ;;  %p518_p7 = por %p517_p4, %p516_p9 }
  0x2c   : > { %p519_p10 = pnand %p518_p7, %p512_p11 }
  0x2e   : > { %522 = shalt.err (!%p519_p10)
}
  0x2f   : > { %s642_s29 = smov 32   ;;  %s643_s3 = smov 2  }
  0x30   : > { %420 = dma.hbm_to_vmem [thread:$0]  (!%p740_p0), %s734_s30, 128, %s736_s4, %s136_s6, %s642_s29, %s642_s29, %s643_s3  }
  0x31   : > { %p174_p12 = scmp.lt.s32.totalorder %s639_s14, 3  ;;  %s399_s7 = sshll.u32 %s727_s25, 1 }
  0x32   : > { %s400_s8 = sshll.u32 %s635_s13, 5  ;;  %p890_p9 = scmp.ge.s32.totalorder %s639_s14, 1 }
  0x33   : > { %s785_s19 = scalar_lea.hbm %s881_s1, %s400_s8  ;;  %s161_s20 = scalar_lea.vmem [#allocation5], %s399_s7 }
  0x34   : > { %p778_p11 = pnand %p890_p9, %p174_p12  ;;  %s169_s26 = sshll.u32 %s161_s20, 4  ;;  %s170_s26 = int_to_ptr.vmem [resolvable:$true] %s169_s26 }
  0x35   : > { %s158_s30 = scalar_lea.sflag [#allocation6], %s727_s25  ;;  %s523_s4 = scalar_lea.hbm %s785_s19, 32 }
  0x36   : > { %s891_s15 = scalar_select %p778_p11, 1, 0 }
  0x37   : > { %p524_p1 = scmp.ne.s32.totalorder %s785_s19, %s523_s4  ;;  %s528_s28 = scalar_lea.hbm %s881_s1, 64 }
  0x38   : > { %p529_p2 = scmp.lt.u32.totalorder %s785_s19, %s881_s1  ;;  %p530_p5 = scmp.lt.u32.totalorder %s528_s28, %s523_s4 }
  0x39   : > { %p526_p6 = pnand %p524_p1, %p495_p3  ;;  %p532_p7 = scmp.lt.u32.totalorder %s523_s4, %s785_s19 }
  0x3a   : > { %p531_p4 = por %p530_p5, %p529_p2 }
  0x3b   : > { %p527_p13 = pneg %p526_p6 }
  0x3c   : > { %p533_p10 = por %p532_p7, %p531_p4 }
  0x3e   : > { %p534_p12 = pnand %p533_p10, %p527_p13 }
  0x40   : > { %537 = shalt.err (!%p534_p12)
}
  0x41   : > { %s538_s25 = scalar_lea.vmem %s170_s26, 32  ;;  %s644_s7 = smov [#allocation5]  }
  0x42   : > { %p539_p9 = scmp.ne.s32.totalorder %s170_s26, %s538_s25  ;;  %s543_s8 = sshll.u32 %s644_s7, 4  ;;  %s544_s8 = int_to_ptr.vmem [resolvable:$false] %s543_s8 }
  0x43   : > { %s545_s16 = scalar_lea.vmem %s544_s8, 64  ;;  %p546_p8 = scmp.lt.s32.totalorder %s170_s26, %s544_s8 }
  0x44   : > { %p541_p1 = pnand %p539_p9, %p495_p3  ;;  %p547_p11 = scmp.lt.s32.totalorder %s545_s16, %s538_s25 }
  0x46   : > { %p542_p6 = pneg %p541_p1  ;;  %p548_p2 = por %p547_p11, %p546_p8 }
  0x48   : > { %p549_p5 = pnand %p548_p2, %p542_p6 }
  0x4a   : > { %552 = shalt.err (!%p549_p5)
}
  0x4b   : > { %423 = dma.hbm_to_vmem [thread:$0]  (!%p740_p0), %s785_s19, 32, %s170_s26, %s158_s30  }
  0x4c   : > { %p892_p13 = scmp.ne.s32.totalorder %s891_s15, 0 }
  0x4d   : > { %s810_s18 = sand.u32 (!%p892_p13), 1, %s623_s10   ;;  %p893_p3 = scmp.ne.s32.totalorder (!%p892_p13), %s886_s21, 0 }
  0x4e   : > { %178 = sbr.rel (%p892_p13) target bundleno = 181 (0xb5), region = 28  ;;  %s402_s20 = sshll.u32 (!%p892_p13), %s810_s18, 3 }
  0x4f   : > { %s181_s4 = scalar_lea.sflag (!%p892_p13), [#allocation3], %s810_s18  ;;  %s184_s6 = scalar_lea.vmem (!%p892_p13), [#allocation2], %s402_s20 }
  0x55   : > { %606 = dma.done.wait (%p893_p3), %s181_s4, 128  }
  0x56   : > { %608 = vsyncadd (%p893_p3), %s181_s4, 4294967168  ;;  %s403_s5 = sshll.u32 %s810_s18, 1  ;;  %s190_s15 = scalar_lea.sflag [#allocation6], %s810_s18 }
  0x57   : > { %s193_s19 = scalar_lea.vmem [#allocation5], %s403_s5 }
  0x58   : > { %610 = dma.done.wait (%p893_p3), %s190_s15, 32  }
  0x59   : > { %612 = vsyncadd (%p893_p3), %s190_s15, 4294967264  ;;  %v220_v0 = vld [vmem:[%s184_s6] sm:$0x3]  ;;  %v404_v1 = vld [vmem:[%s184_s6 + $0x2] sm:$0x3]  ;;  %v645_v31 = vmov 0.0  }
  0x5a   : > { %v405_v2 = vld [vmem:[%s184_s6 + $0x4] sm:$0x3]  ;;  %v227_v3 = vmax.f32 %v220_v0, %v404_v1  ;;  %v406_v4 = vld [vmem:[%s184_s6 + $0x6] sm:$0x3]  ;;  %v219_v20 = vld [vmem:[%s193_s19] sm:$0x3] }
  0x5b   : > { %vm234_vm0 = vcmp.eq.s32.totalorder %v219_v20, 0  ;;  %vm241_vm1 = vcmp.eq.s32.totalorder %v219_v20, 1  ;;  %vm248_vm2 = vcmp.eq.s32.totalorder %v219_v20, 2  ;;  %vm255_vm3 = vcmp.eq.s32.totalorder %v219_v20, 3  ;;  %s217_s21 = scalar_lea.vmem [#allocation7], %s810_s18  ;;  %s407_s30 = sshll.u32 %s631_s12, 4 }
  0x5c   : > { %v228_v5 = vmax.f32 %v227_v3, %v405_v2  ;;  %v236_v32 = vsel %vm234_vm0, 0.1, %v645_v31  ;;  %vm268_vm4 = vcmask 1041408   ;;  %s291_s26 = sshll.u32 %s217_s21, 4  ;;  %s833_s29 = scalar_lea.hbm %s882_s2, %s407_s30  ;;  %s828_s26 = int_to_ptr.vmem [resolvable:$true] %s291_s26 }
  0x5d   : > { %v243_v33 = vsel %vm241_vm1, 0.2, %v236_v32  ;;  %s278_s3 = scalar_lea.sflag [#allocation4], %s810_s18  ;;  %s553_s25 = scalar_lea.vmem %s828_s26, 16 }
  0x5e   : > { %v229_v6 = vmax.f32 %v228_v5, %v406_v4  ;;  %v250_v34 = vsel %vm248_vm2, 0.3, %v243_v33  ;;  %p554_p8 = scmp.ne.s32.totalorder %s828_s26, %s553_s25  ;;  %p894_p0 = scmp.ne.s32.totalorder %s887_s22, 0 }
  0x5f   : > { %v257_v36 = vsel %vm255_vm3, 0.4, %v250_v34  ;;  %s646_s12 = smov [#allocation7]  }
  0x60   : > { %v230_v7 = vsub.f32 %v220_v0, %v229_v6  ;;  %v237_v8 = vsub.f32 %v404_v1, %v229_v6  ;;  %v244_v9 = vsub.f32 %v405_v2, %v229_v6  ;;  %v251_v10 = vsub.f32 %v406_v4, %v229_v6  ;;  %p555_p11 = pnand %p554_p8, %p894_p0  ;;  %s557_s7 = sshll.u32 %s646_s12, 4  ;;  %s558_s7 = int_to_ptr.vmem [resolvable:$false] %s557_s7 }
  0x61   : > { %s559_s8 = scalar_lea.vmem %s558_s7, 32  ;;  %p560_p7 = scmp.lt.s32.totalorder %s828_s26, %s558_s7 }
  0x62   : > { %v231_v11 = vmul.f32 1.442695, %v230_v7  ;;  %v238_v12 = vmul.f32 1.442695, %v237_v8  ;;  %v245_v13 = vmul.f32 1.442695, %v244_v9  ;;  %p556_p4 = pneg %p555_p11  ;;  %p561_p10 = scmp.lt.s32.totalorder %s559_s8, %s553_s25 }
  0x63   : > { %v252_v14 = vmul.f32 1.442695, %v251_v10  ;;  %v235_v23 = vsel %vm234_vm0, %v230_v7, 0.0 }
  0x64   : > { %481 = vpow2.f32 %v231_v11  ;;  %v242_v24 = vsel %vm241_vm1, %v237_v8, %v235_v23  ;;  %p562_p12 = por %p561_p10, %p560_p7 }
  0x65   : > { %483 = vpow2.f32 %v238_v12  ;;  %v249_v25 = vsel %vm248_vm2, %v244_v9, %v242_v24 }
  0x66   : > { %485 = vpow2.f32 %v245_v13  ;;  %v256_v27 = vsel %vm255_vm3, %v251_v10, %v249_v25  ;;  %p563_p9 = pnand %p562_p12, %p556_p4 }
  0x67   : > { %487 = vpow2.f32 %v252_v14 }
  0x6e   : > { %v482_v15 = vpop.eup %481 }
  0x6f   : > { %v484_v16 = vpop.eup %483 }
  0x70   : > { %v486_v17 = vpop.eup %485  ;;  %v240_v18 = vadd.f32 %v484_v16, %v482_v15 }
  0x71   : > { %v488_v19 = vpop.eup %487 }
  0x72   : > { %v247_v21 = vadd.f32 %v486_v17, %v240_v18 }
  0x74   : > { %v254_v22 = vadd.f32 %v488_v19, %v247_v21 }
  0x76   : > { %489 = vlog2.f32 %v254_v22 }
  0x80   : > { %v490_v26 = vpop.eup %489 }
  0x81   : > { %v259_v28 = vmul.f32 0.6931472, %v490_v26 }
  0x83   : > { %v260_v29 = vsub.f32 %v256_v27, %v259_v28 }
  0x85   : > { %v261_v30 = vmul.f32 1.442695, %v260_v29  ;;  %v263_v38 = vmul.f32 %v260_v29, %v257_v36 }
  0x87   : > { %491 = vpow2.f32 %v261_v30 }
  0x91   : > { %v492_v35 = vpop.eup %491 }
  0x92   : > { %v264_v37 = vsub.f32 1.0, %v492_v35 }
  0x94   : > { %v265_v39 = vmul.f32 %v264_v37, %v264_v37 }
  0x96   : > { %v266_v40 = vsub.f32 0.0, %v265_v39 }
  0x98   : > { %v267_v41 = vmul.f32 %v266_v40, %v263_v38 }
  0x9a   : > { %v269_v42 = vsel %vm268_vm4, %v267_v41, 0.0 }
  0x9b   : > { %v270_v43 = vrot.slane %v269_v42, 4 }
  0x9d   : > { %v271_v44 = vadd.f32 %v270_v43, %v269_v42 }
  0x9f   : > { %v272_v45 = vrot.slane %v271_v44, 2 }
  0xa1   : > { %v273_v46 = vadd.f32 %v272_v45, %v271_v44 }
  0xa3   : > { %v274_v47 = vrot.slane %v273_v46, 1 }
  0xa5   : > { %v275_v48 = vadd.f32 %v274_v47, %v273_v46 }
  0xa7   : > { %276 = vst [vmem:[%s217_s21] sm:$0x1] %v275_v48 }
  0xa8   : > { %566 = shalt.err (!%p563_p9)
}
  0xa9   : > { %s567_s16 = scalar_lea.hbm %s833_s29, 16  ;;  %s571_s4 = scalar_lea.hbm %s882_s2, 32 }
  0xaa   : > { %p568_p1 = scmp.ne.s32.totalorder %s833_s29, %s567_s16  ;;  %p572_p5 = scmp.lt.u32.totalorder %s833_s29, %s882_s2 }
  0xab   : > { %p573_p13 = scmp.lt.u32.totalorder %s571_s4, %s567_s16  ;;  %p575_p8 = scmp.lt.u32.totalorder %s567_s16, %s833_s29 }
  0xac   : > { %p569_p6 = pnand %p568_p1, %p894_p0 }
  0xad   : > { %p574_p3 = por %p573_p13, %p572_p5 }
  0xae   : > { %p570_p2 = pneg %p569_p6 }
  0xaf   : > { %p576_p11 = por %p575_p8, %p574_p3 }
  0xb1   : > { %p577_p4 = pnand %p576_p11, %p570_p2 }
  0xb3   : > { %580 = shalt.err (!%p577_p4)
}
  0xb4   : > { %415 = dma.vmem_to_hbm [thread:$0]  (%p894_p0), %s828_s26, 16, %s833_s29, %s278_s3  }
  0xb5 PF: > { %s303_s15 = sand.u32 1, %s619_s9   ;;  %p895_p7 = scmp.ne.s32.totalorder %s888_s24, 0 }
  0xb6   : > { %p896_p10 = scmp.ge.s32.totalorder %s639_s14, 2  ;;  %s304_s19 = scalar_lea.sflag [#allocation4], %s303_s15 }
  0xb8   : > { %p425_p12 = pnand %p896_p10, %p895_p7 }
  0xba   : > { %614 = dma.done.wait (!%p425_p12), %s304_s19, 16  }
  0xbb   : > { %616 = vsyncadd (!%p425_p12), %s304_s19, 4294967280  ;;  %s21_s14 = sadd.s32 1, %s639_s14   ;;  %s897_s9 = smov %s623_s10 }
  0xbc   : > { %p18_p9 = scmp.ge.s32.totalorder %s21_s14, 4   ;;  %s898_s10 = smov %s627_s11 }
  0xbd   : > { %s899_s11 = smov %s718_s23  ;;  %s900_s12 = smov %s635_s13 }
  0xbe   : > { %s901_s13 = smov %s903_s17  ;;  %20 = sbr.rel (!%p18_p9) target bundleno = 8 (0x8), region = 89 }
  0xc5   :  { %308 = vsyncpa [#allocation3], 1 }
  0xc6   :  { %310 = vsyncpa [#allocation3 + $0x1], 1 }
  0xc7   :  { %311 = vsyncpa [#allocation6], 1 }
  0xc8   :  { %313 = vsyncpa [#allocation6 + $0x1], 1 }
  0xc9   :  { %314 = vsyncpa [#allocation4], 1 }
  0xca   :  { %316 = vsyncpa [#allocation4 + $0x1], 1 }

</bundles_post_ra>
